<compile_context>
chip_gen: v7x
topology: tpu7x:2x2x1
jax: 0.10.0
libtpu: 0.0.40
codegen_flags: <defaults>
</compile_context>

<pallas_src>
import jax
import jax.numpy as jnp
from jax.experimental import pallas as pl
from jax.experimental.pallas import tpu as pltpu


def fvta_kernel(q_ref, k_ref, v_ref, qvalid_ref, kmask_ref, out_ref):
    q = q_ref[...]            # (TB, Lq, Dk)
    k = k_ref[...]            # (TB, Lk, Dk)
    v = v_ref[...]            # (TB, Lk, Dv)
    qvalid = qvalid_ref[...]  # (TB, Lq, 1)  1.0 -> valid query position
    kmask = kmask_ref[...]    # (TB, 1, Lk)  1.0 -> masked (padded) key/value

    lq = q.shape[1]

    # raw logits on the MXU (batched): (TB, Lq, Lk)
    w = jnp.einsum('bqd,bkd->bqk', q, k, preferred_element_type=jnp.float32)

    # A logit is dropped from the softmax when either
    #  (a) its key/value column is masked (torch zeroes k there -> dot == 0 ->
    #      caught by the ==0 sentinel), or
    #  (b) the raw dot product is exactly 0 (the torch "weights==0 -> -inf"
    #      sentinel, retained for faithfulness).
    col_valid = kmask <= 0.0                          # (TB, 1, Lk)
    valid = jnp.logical_and(w != 0.0, col_valid)      # (TB, Lq, Lk)

    neg_inf = jnp.float32(-jnp.inf)
    w_inf = jnp.where(valid, w, neg_inf)
    row_max = jnp.max(w_inf, axis=-1, keepdims=True)            # (TB, Lq, 1)
    safe_max = jnp.where(row_max == neg_inf, 0.0, row_max)      # all-masked rows
    p = jnp.where(valid, jnp.exp(w_inf - safe_max), 0.0)
    denom = jnp.sum(p, axis=-1, keepdims=True)
    weights = jnp.where(denom > 0.0,
                        p / jnp.where(denom > 0.0, denom, 1.0),
                        0.0)

    # weights @ values (MXU).  Masked columns have exactly-zero weight, so the
    # un-zeroed values contribute nothing (matches torch's zeroed values).
    att = jnp.einsum('bqk,bkd->bqd', weights, v,
                     preferred_element_type=jnp.float32)        # (TB, Lq, Dv)

    # Zero attention rows past each query length (== torch zeroing q rows),
    # then mean over Lq (divisor includes the padded rows, like torch.mean).
    att = jnp.where(qvalid > 0.0, att, 0.0)
    out = jnp.sum(att, axis=1) / float(lq)                      # (TB, Dv)
    out_ref[...] = out.astype(out_ref.dtype)


def _pick_batch_block(batch, requested):
    """Batch block must be a multiple of 8 or equal to the full batch dim."""
    if batch <= 8:
        return batch
    tb = max(8, min(requested, batch))
    return (tb // 8) * 8


def fvta_forward(query, query_lengths, keys, values, mask, *, batch_block=32):
    B, Lq, Dk = query.shape
    _, Lk, Dv = values.shape

    # (B, Lq, 1): 1.0 where query position < length; (B, 1, Lk): torch-style mask.
    qvalid = (jnp.arange(Lq, dtype=jnp.int32)[None, :]
              < query_lengths.astype(jnp.int32)[:, None]).astype(jnp.float32)
    qvalid = qvalid[:, :, None]
    kmask = mask.astype(jnp.float32).reshape(B, 1, Lk)

    TB = _pick_batch_block(B, batch_block)
    Bp = pl.cdiv(B, TB) * TB
    if Bp != B:
        pad = Bp - B
        query = jnp.pad(query, ((0, pad), (0, 0), (0, 0)))
        keys = jnp.pad(keys, ((0, pad), (0, 0), (0, 0)))
        values = jnp.pad(values, ((0, pad), (0, 0), (0, 0)))
        qvalid = jnp.pad(qvalid, ((0, pad), (0, 0), (0, 0)))            # invalid
        kmask = jnp.pad(kmask, ((0, pad), (0, 0), (0, 0)),
                        constant_values=1.0)                             # masked

    out = pl.pallas_call(
        fvta_kernel,
        out_shape=jax.ShapeDtypeStruct((Bp, Dv), jnp.float32),
        grid_spec=pltpu.PrefetchScalarGridSpec(
            num_scalar_prefetch=0,
            grid=(Bp // TB,),
            in_specs=[
                pl.BlockSpec((TB, Lq, Dk), lambda b: (b, 0, 0)),   # query
                pl.BlockSpec((TB, Lk, Dk), lambda b: (b, 0, 0)),   # keys
                pl.BlockSpec((TB, Lk, Dv), lambda b: (b, 0, 0)),   # values
                pl.BlockSpec((TB, Lq, 1),  lambda b: (b, 0, 0)),   # query validity
                pl.BlockSpec((TB, 1, Lk),  lambda b: (b, 0, 0)),   # key/value mask
            ],
            out_specs=pl.BlockSpec((TB, Dv), lambda b: (b, 0)),
        ),
        compiler_params=pltpu.CompilerParams(
            dimension_semantics=("parallel",)),
    )(query, keys, values, qvalid, kmask)
    return out[:B]


def fvta_reference(query, query_lengths, keys, values, mask):
    """Pure-JAX mirror of the PyTorch forward (for correctness checking)."""
    B, Lq, Dk = query.shape
    qpos = jnp.arange(Lq)[None, :, None]
    q = jnp.where(qpos < query_lengths[:, None, None], query, 0.0)
    m = mask[:, :, None]
    k = jnp.where(m > 0, 0.0, keys)
    v = jnp.where(m > 0, 0.0, values)
    w = jnp.einsum('bqd,bkd->bqk', q, k)
    w = jnp.where(w == 0.0, -jnp.inf, w)
    x_max = jnp.max(w, axis=-1, keepdims=True)
    e = jnp.exp(w - x_max)                      # all -inf row -> NaN (like torch)
    sm = e / jnp.sum(e, axis=-1, keepdims=True)
    sm = jnp.where(jnp.isnan(sm), 0.0, sm)
    out = jnp.einsum('bqk,bkd->bqd', sm, v)
    return jnp.mean(out, axis=1)


if __name__ == "__main__":
    # small deterministic example: B=16, Lq=8, Lk=8, key_dim=32, value_dim=32
    B, Lq, Lk, Dk, Dv = 16, 8, 8, 32, 32
    key = jax.random.PRNGKey(0)
    k1, k2, k3, k4, k5 = jax.random.split(key, 5)

    query = jax.random.normal(k1, (B, Lq, Dk), dtype=jnp.float32)
    keys = jax.random.normal(k2, (B, Lk, Dk), dtype=jnp.float32)
    values = jax.random.normal(k3, (B, Lk, Dv), dtype=jnp.float32)

    query_lengths = jax.random.randint(k4, (B,), 1, Lq + 1).astype(jnp.int32)
    kv_lengths = jax.random.randint(k5, (B,), 1, Lk + 1).astype(jnp.int32)
    # mask == 1 at padded key/value positions (as in the torch module)
    mask = (jnp.arange(Lk)[None, :] >= kv_lengths[:, None]).astype(jnp.float32)

    # batch_block=8 -> grid of 2 steps of 8 batches each (exercises blocking).
    out = fvta_forward(query, query_lengths, keys, values, mask, batch_block=8)
    out = jax.block_until_ready(out)

    ref = fvta_reference(query, query_lengths, keys, values, mask)
    assert out.shape == (B, Dv)
    assert jnp.allclose(out, ref, rtol=1e-5, atol=1e-5), (out, ref)

    # TODO(synk): the torch module mutates keys/values in place via
    # .data.masked_fill_; this functional version does not replicate that
    # input-aliasing side effect (bf16 input casts for v6e/v7x were also left
    # out to keep the f32 reference check tight).
    print("KERNEL_OK")
</pallas_src>

<mosaic_0001>
module attributes {stable_mosaic.version = 11 : i64} {
  func.func @fvta_kernel(%arg0: i32, %arg1: memref<8x8x32xf32, #tpu.memory_space<vmem>>, %arg2: memref<8x8x32xf32, #tpu.memory_space<vmem>>, %arg3: memref<8x8x32xf32, #tpu.memory_space<vmem>>, %arg4: memref<8x8x1xf32, #tpu.memory_space<vmem>>, %arg5: memref<8x1x8xf32, #tpu.memory_space<vmem>>, %arg6: memref<8x32xf32, #tpu.memory_space<vmem>>) attributes {dimension_semantics = [#tpu.dimension_semantics<parallel>], iteration_bounds = array<i64: 2>, scalar_prefetch = 0 : i64, scratch_operands = 0 : i64, tpu.core_type = #tpu.core_type<tc>, window_params = [{transform_indices = @transform_0, window_bounds = array<i64: 8, 8, 32>}, {transform_indices = @transform_1, window_bounds = array<i64: 8, 8, 32>}, {transform_indices = @transform_2, window_bounds = array<i64: 8, 8, 32>}, {transform_indices = @transform_3, window_bounds = array<i64: 8, 8, 1>}, {transform_indices = @transform_4, window_bounds = array<i64: 8, 1, 8>}, {transform_indices = @transform_5, window_bounds = array<i64: 8, 32>}]} {
    %c0 = arith.constant 0 : index
    %c0_0 = arith.constant 0 : index
    %c0_1 = arith.constant 0 : index
    %0 = vector.load %arg1[%c0, %c0_0, %c0_1] : memref<8x8x32xf32, #tpu.memory_space<vmem>>, vector<8x8x32xf32>
    %c0_2 = arith.constant 0 : index
    %c0_3 = arith.constant 0 : index
    %c0_4 = arith.constant 0 : index
    %1 = vector.load %arg2[%c0_2, %c0_3, %c0_4] : memref<8x8x32xf32, #tpu.memory_space<vmem>>, vector<8x8x32xf32>
    %c0_5 = arith.constant 0 : index
    %c0_6 = arith.constant 0 : index
    %c0_7 = arith.constant 0 : index
    %2 = vector.load %arg3[%c0_5, %c0_6, %c0_7] : memref<8x8x32xf32, #tpu.memory_space<vmem>>, vector<8x8x32xf32>
    %c0_8 = arith.constant 0 : index
    %c0_9 = arith.constant 0 : index
    %c0_10 = arith.constant 0 : index
    %3 = vector.load %arg4[%c0_8, %c0_9, %c0_10] : memref<8x8x1xf32, #tpu.memory_space<vmem>>, vector<8x8x1xf32>
    %c0_11 = arith.constant 0 : index
    %c0_12 = arith.constant 0 : index
    %c0_13 = arith.constant 0 : index
    %4 = vector.load %arg5[%c0_11, %c0_12, %c0_13] : memref<8x1x8xf32, #tpu.memory_space<vmem>>, vector<8x1x8xf32>
    "tpu.trace_start"() <{level = 10 : i32, message = "bqd,bkd->bqk"}> : () -> ()
    %cst = arith.constant dense<0.000000e+00> : vector<8x8x8xf32>
    %5 = tpu.matmul %0, %1, %cst {dimension_numbers = #tpu.dot_dimension_numbers<[2], [2], [1], [1], [0, 0, 0, 1, 1, 1], [0], [0]>} : vector<8x8x32xf32>, vector<8x8x32xf32>, vector<8x8x8xf32> -> vector<8x8x8xf32>
    %cst_14 = arith.constant 0.000000e+00 : f32
    "tpu.trace_stop"() : () -> ()
    %6 = vector.broadcast %cst_14 : f32 to vector<8x1x8xf32>
    %7 = arith.cmpf ole, %4, %6 : vector<8x1x8xf32>
    %cst_15 = arith.constant 0.000000e+00 : f32
    %8 = vector.broadcast %cst_15 : f32 to vector<8x8x8xf32>
    %9 = arith.cmpf one, %5, %8 : vector<8x8x8xf32>
    %10 = vector.broadcast %7 : vector<8x1x8xi1> to vector<8x8x8xi1>
    %11 = arith.andi %9, %10 : vector<8x8x8xi1>
    %cst_16 = arith.constant 0xFF800000 : f32
    %12 = vector.broadcast %cst_16 : f32 to vector<8x8x8xf32>
    %13 = arith.select %11, %5, %12 : vector<8x8x8xi1>, vector<8x8x8xf32>
    %cst_17 = arith.constant dense<0xFF800000> : vector<8x8xf32>
    %14 = vector.multi_reduction <maximumf>, %13, %cst_17 [2] : vector<8x8x8xf32> to vector<8x8xf32>
    %15 = vector.shape_cast %14 : vector<8x8xf32> to vector<8x8x1xf32>
    %cst_18 = arith.constant 0xFF800000 : f32
    %16 = vector.broadcast %cst_18 : f32 to vector<8x8x1xf32>
    %17 = arith.cmpf oeq, %15, %16 : vector<8x8x1xf32>
    %cst_19 = arith.constant 0.000000e+00 : f32
    %18 = vector.broadcast %cst_19 : f32 to vector<8x8x1xf32>
    %19 = arith.select %17, %18, %15 : vector<8x8x1xi1>, vector<8x8x1xf32>
    %20 = vector.broadcast %19 : vector<8x8x1xf32> to vector<8x8x8xf32>
    %21 = arith.subf %13, %20 : vector<8x8x8xf32>
    %22 = math.exp %21 : vector<8x8x8xf32>
    %cst_20 = arith.constant 0.000000e+00 : f32
    %23 = vector.broadcast %cst_20 : f32 to vector<8x8x8xf32>
    %24 = arith.select %11, %22, %23 : vector<8x8x8xi1>, vector<8x8x8xf32>
    %cst_21 = arith.constant dense<0.000000e+00> : vector<8x8xf32>
    %25 = vector.multi_reduction <add>, %24, %cst_21 [2] : vector<8x8x8xf32> to vector<8x8xf32>
    %26 = vector.shape_cast %25 : vector<8x8xf32> to vector<8x8x1xf32>
    %cst_22 = arith.constant 0.000000e+00 : f32
    %27 = vector.broadcast %cst_22 : f32 to vector<8x8x1xf32>
    %28 = arith.cmpf ogt, %26, %27 : vector<8x8x1xf32>
    %cst_23 = arith.constant 0.000000e+00 : f32
    %29 = vector.broadcast %cst_23 : f32 to vector<8x8x1xf32>
    %30 = arith.cmpf ogt, %26, %29 : vector<8x8x1xf32>
    %cst_24 = arith.constant 1.000000e+00 : f32
    %31 = vector.broadcast %cst_24 : f32 to vector<8x8x1xf32>
    %32 = arith.select %30, %26, %31 : vector<8x8x1xi1>, vector<8x8x1xf32>
    %33 = vector.broadcast %32 : vector<8x8x1xf32> to vector<8x8x8xf32>
    %34 = arith.divf %24, %33 : vector<8x8x8xf32>
    %cst_25 = arith.constant 0.000000e+00 : f32
    %35 = vector.shape_cast %28 : vector<8x8x1xi1> to vector<8x8x1xi1>
    %36 = vector.broadcast %35 : vector<8x8x1xi1> to vector<8x8x8xi1>
    %37 = vector.broadcast %cst_25 : f32 to vector<8x8x8xf32>
    %38 = arith.select %36, %34, %37 : vector<8x8x8xi1>, vector<8x8x8xf32>
    "tpu.trace_start"() <{level = 10 : i32, message = "bqk,bkd->bqd"}> : () -> ()
    %cst_26 = arith.constant dense<0.000000e+00> : vector<8x8x32xf32>
    %39 = tpu.matmul %38, %2, %cst_26 {dimension_numbers = #tpu.dot_dimension_numbers<[2], [1], [1], [2], [0, 0, 0, 1, 1, 2], [0], [0]>} : vector<8x8x8xf32>, vector<8x8x32xf32>, vector<8x8x32xf32> -> vector<8x8x32xf32>
    %cst_27 = arith.constant 0.000000e+00 : f32
    "tpu.trace_stop"() : () -> ()
    %40 = vector.broadcast %cst_27 : f32 to vector<8x8x1xf32>
    %41 = arith.cmpf ogt, %3, %40 : vector<8x8x1xf32>
    %cst_28 = arith.constant 0.000000e+00 : f32
    %42 = vector.shape_cast %41 : vector<8x8x1xi1> to vector<8x8x1xi1>
    %43 = vector.broadcast %42 : vector<8x8x1xi1> to vector<8x8x32xi1>
    %44 = vector.broadcast %cst_28 : f32 to vector<8x8x32xf32>
    %45 = arith.select %43, %39, %44 : vector<8x8x32xi1>, vector<8x8x32xf32>
    %cst_29 = arith.constant dense<0.000000e+00> : vector<8x32xf32>
    %46 = vector.multi_reduction <add>, %45, %cst_29 [1] : vector<8x8x32xf32> to vector<8x32xf32>
    %cst_30 = arith.constant 8.000000e+00 : f32
    %47 = vector.broadcast %cst_30 : f32 to vector<8x32xf32>
    %48 = arith.divf %46, %47 : vector<8x32xf32>
    %c0_31 = arith.constant 0 : index
    %c0_32 = arith.constant 0 : index
    %49 = vector.load %arg6[%c0_31, %c0_32] : memref<8x32xf32, #tpu.memory_space<vmem>>, vector<8x32xf32>
    tpu.vector_store %arg6[%c0_31, %c0_32], %48 {strides = array<i32>} : memref<8x32xf32, #tpu.memory_space<vmem>>, vector<8x32xf32>,
    return
  }
  func.func @transform_0(%arg0: i32) -> (i32, i32, i32) {
    %c0_i32 = arith.constant 0 : i32
    %c0_i32_0 = arith.constant 0 : i32
    %c0_i32_1 = arith.constant 0 : i32
    return %arg0, %c0_i32, %c0_i32_0 : i32, i32, i32
  }
  func.func @transform_1(%arg0: i32) -> (i32, i32, i32) {
    %c0_i32 = arith.constant 0 : i32
    %c0_i32_0 = arith.constant 0 : i32
    %c0_i32_1 = arith.constant 0 : i32
    return %arg0, %c0_i32, %c0_i32_0 : i32, i32, i32
  }
  func.func @transform_2(%arg0: i32) -> (i32, i32, i32) {
    %c0_i32 = arith.constant 0 : i32
    %c0_i32_0 = arith.constant 0 : i32
    %c0_i32_1 = arith.constant 0 : i32
    return %arg0, %c0_i32, %c0_i32_0 : i32, i32, i32
  }
  func.func @transform_3(%arg0: i32) -> (i32, i32, i32) {
    %c0_i32 = arith.constant 0 : i32
    %c0_i32_0 = arith.constant 0 : i32
    %c0_i32_1 = arith.constant 0 : i32
    return %arg0, %c0_i32, %c0_i32_0 : i32, i32, i32
  }
  func.func @transform_4(%arg0: i32) -> (i32, i32, i32) {
    %c0_i32 = arith.constant 0 : i32
    %c0_i32_0 = arith.constant 0 : i32
    %c0_i32_1 = arith.constant 0 : i32
    return %arg0, %c0_i32, %c0_i32_0 : i32, i32, i32
  }
  func.func @transform_5(%arg0: i32) -> (i32, i32) {
    %c0_i32 = arith.constant 0 : i32
    %c0_i32_0 = arith.constant 0 : i32
    return %arg0, %c0_i32 : i32, i32
  }
}

</mosaic_0001>

<bundles_post_ra>
// kernel: tpu_custom_call.1
= control target key start
LH: loop header
LB: loop body
LE: loop exit
PB: predicated region body
PF: predicated region fallthrough
CT: control target
= control target key end

     0   :  { %10 = vsyncpa [#allocation3], 0  ;;  %s3056_s0 = inlined_call_operand.vmem [shape: f32[16,8,32], index: 0, kind: input, shape index: {}]   ;;  %s3057_s1 = inlined_call_operand.hbm [shape: f32[16,8,32], index: 1, kind: input, shape index: {}]   ;;  %s3058_s2 = inlined_call_operand.hbm [shape: f32[16,8,32], index: 2, kind: input, shape index: {}]   ;;  %s3059_s3 = inlined_call_operand.vmem [shape: f32[16,8,1], index: 3, kind: input, shape index: {}]   ;;  %s3060_s4 = inlined_call_operand.vmem [shape: f32[16,1,8], index: 4, kind: input, shape index: {}]   ;;  %s3061_s5 = inlined_call_operand.hbm [shape: f32[16,32], index: 5, kind: output, shape index: {}]  }
   0x1   :  { %12 = vsyncpa [#allocation3 + $0x1], 0 }
   0x2   :  { %13 = vsyncpa [#allocation6], 0 }
   0x3   :  { %15 = vsyncpa [#allocation6 + $0x1], 0 }
   0x4   :  { %16 = vsyncpa [#allocation4], 0 }
   0x5   :  { %18 = vsyncpa [#allocation4 + $0x1], 0  ;;  %s2519_s18 = smov 0   ;;  %s2521_s19 = smov 0  }
   0x6   :  { %s2523_s20 = smov 0   ;;  %s2525_s21 = smov 0  }
   0x7 LB: > { %s2540_s22 = sadd.s32 4294967295, %s2479_s21   ;;  %s2099_s23 = sadd.s32 4294967294, %s2479_s21   ;;  %s2479_s21 = sphi %s2525_s21, %s3101_s21   ;;  %s2475_s20 = sphi %s2523_s20, %s3100_s20   ;;  %s2471_s19 = sphi %s2521_s19, %s3099_s19   ;;  %s2467_s18 = sphi %s2519_s18, %s3098_s18  }
   0x8   : > { %s2544_s24 = sadd.s32 1, %s2479_s21   ;;  %s57_s25 = sadd.s32 1, %s2475_s20 }
   0x9   : > { %s54_s26 = ssub.s32 %s2479_s21, %s2544_s24  ;;  %p64_p0 = scmp.ne.s32.totalorder %s2475_s20, %s2471_s19 }
   0xa   : > { %p55_p1 = scmp.eq.s32.totalorder %s54_s26, 0  ;;  %p65_p2 = scmp.eq.s32.totalorder %s2479_s21, 0 }
   0xb   : > { %p70_p3 = scmp.ne.s32.totalorder %s2471_s19, %s2467_s18  ;;  %p71_p4 = scmp.eq.s32.totalorder %s2540_s22, 0 }
   0xc   : > { %s2556_s27 = scalar_select %p55_p1, %s2475_s20, %s57_s25  }
   0xd   : > { %p2558_p5 = por %p65_p2, %p64_p0  ;;  %p2562_p6 = por %p71_p4, %p70_p3 }
   0xe   : > { %p172_p7 = scmp.eq.s32.totalorder %s2540_s22, 1  ;;  %p178_p8 = scmp.eq.s32.totalorder %s2099_s23, 1 }
   0xf   : > { %s3066_s29 = scalar_select %p2562_p6, 1, 0 }
  0x10   : > { %p2276_p10 = scmp.lt.s32.totalorder %s2479_s21, 2  ;;  %p2569_p11 = por %p172_p7, %p64_p0 }
  0x11   : > { %p2573_p12 = por %p178_p8, %p70_p3  ;;  %s2578_s7 = sand.u32 1, %s2475_s20  }
  0x12   : > { %s3067_s30 = scalar_select %p2569_p11, 1, 0 }
  0x13   : > { %s3068_s6 = scalar_select %p2573_p12, 1, 0 }
  0x14   : > { %s2145_s8 = sshll.u32 %s2479_s21, 10  ;;  %s2102_s9 = sshll.u32 %s2578_s7, 6 }
  0x15   : > { %s2587_s12 = scalar_lea.hbm %s3057_s1, %s2145_s8  ;;  %s211_s13 = scalar_lea.vmem [#allocation2], %s2102_s9 }
  0x16   : > { %s218_s14 = sshll.u32 %s211_s13, 4  ;;  %p2593_p13 = pnand %p2276_p10, %p2558_p5  ;;  %s2597_s14 = int_to_ptr.vmem [resolvable:$true] %s218_s14 }
  0x17   : > { %s208_s16 = scalar_lea.sflag [#allocation3], %s2578_s7  ;;  %s2349_s17 = scalar_lea.hbm %s2587_s12, 1024 }
  0x18   : > { %p2350_p0 = scmp.ne.s32.totalorder %s2587_s12, %s2349_s17  ;;  %p2351_p1 = pneg %p2593_p13 }
  0x19   : > { %s2354_s26 = scalar_lea.hbm %s3057_s1, 2048  ;;  %p2355_p4 = scmp.lt.u32.totalorder %s2587_s12, %s3057_s1 }
  0x1a   : > { %p2352_p2 = pnand %p2351_p1, %p2350_p0  ;;  %p2356_p5 = scmp.lt.u32.totalorder %s2354_s26, %s2349_s17 }
  0x1b   : > { %p2358_p8 = scmp.lt.u32.totalorder %s2349_s17, %s2587_s12 }
  0x1c   : > { %p2353_p3 = pneg %p2352_p2  ;;  %p2357_p7 = por %p2356_p5, %p2355_p4 }
  0x1e   : > { %p2359_p10 = por %p2358_p8, %p2357_p7 }
  0x20   : > { %p2360_p9 = pnand %p2359_p10, %p2353_p3 }
  0x22   : > { %2363 = shalt.err (!%p2360_p9)
}
  0x23   : > { %s2364_s11 = scalar_lea.vmem %s2597_s14, 1024  ;;  %s2481_s13 = smov [#allocation2]  }
  0x24   : > { %p2365_p0 = scmp.ne.s32.totalorder %s2597_s14, %s2364_s11  ;;  %s2369_s23 = sshll.u32 %s2481_s13, 4  ;;  %s2370_s23 = int_to_ptr.vmem [resolvable:$false] %s2369_s23 }
  0x25   : > { %s2371_s25 = scalar_lea.vmem %s2370_s23, 2048  ;;  %p2372_p11 = scmp.lt.s32.totalorder %s2597_s14, %s2370_s23 }
  0x26   : > { %p2367_p2 = pnand %p2365_p0, %p2351_p1  ;;  %p2373_p4 = scmp.lt.s32.totalorder %s2371_s25, %s2364_s11 }
  0x28   : > { %p2368_p12 = pneg %p2367_p2  ;;  %p2374_p5 = por %p2373_p4, %p2372_p11 }
  0x2a   : > { %p2375_p7 = pnand %p2374_p5, %p2368_p12 }
  0x2c   : > { %2378 = shalt.err (!%p2375_p7)
}
  0x2d   : > { %s3063_s17 = smov 128   ;;  %s2483_s26 = smov 8  }
  0x2e   : > { %2268 = dma.hbm_to_vmem [thread:$0]  (!%p2593_p13), %s2587_s12, 1024, %s2597_s14, %s208_s16, %s3063_s17, %s3063_s17, %s2483_s26  }
  0x2f   : > { %p2108_p9 = scmp.ge.s32.totalorder %s2479_s21, 1  ;;  %p264_p11 = scmp.lt.s32.totalorder %s2479_s21, 3 }
  0x30   : > { %s2641_s13 = scalar_lea.hbm %s3058_s2, %s2145_s8  ;;  %s232_s23 = scalar_lea.vmem [#allocation5], %s2102_s9 }
  0x31   : > { %p2632_p12 = pnand %p2108_p9, %p264_p11  ;;  %s239_s25 = sshll.u32 %s232_s23, 4  ;;  %s2645_s25 = int_to_ptr.vmem [resolvable:$true] %s239_s25 }
  0x32   : > { %s229_s12 = scalar_lea.sflag [#allocation6], %s2578_s7  ;;  %s2379_s14 = scalar_lea.hbm %s2641_s13, 1024 }
  0x33   : > { %p2380_p3 = scmp.ne.s32.totalorder %s2641_s13, %s2379_s14  ;;  %s2384_s8 = scalar_lea.hbm %s3058_s2, 2048 }
  0x34   : > { %p2385_p0 = scmp.lt.u32.totalorder %s2641_s13, %s3058_s2  ;;  %p2386_p2 = scmp.lt.u32.totalorder %s2384_s8, %s2379_s14 }
  0x35   : > { %p2382_p8 = pnand %p2380_p3, %p2351_p1  ;;  %p2388_p5 = scmp.lt.u32.totalorder %s2379_s14, %s2641_s13 }
  0x36   : > { %p2387_p4 = por %p2386_p2, %p2385_p0 }
  0x37   : > { %p2383_p10 = pneg %p2382_p8 }
  0x38   : > { %p2389_p7 = por %p2388_p5, %p2387_p4 }
  0x3a   : > { %p2390_p9 = pnand %p2389_p7, %p2383_p10 }
  0x3c   : > { %2393 = shalt.err (!%p2390_p9)
}
  0x3d   : > { %s2394_s9 = scalar_lea.vmem %s2645_s25, 1024  ;;  %s2484_s23 = smov [#allocation5]  }
  0x3e   : > { %p2395_p11 = scmp.ne.s32.totalorder %s2645_s25, %s2394_s9  ;;  %s2399_s16 = sshll.u32 %s2484_s23, 4  ;;  %s2400_s16 = int_to_ptr.vmem [resolvable:$false] %s2399_s16 }
  0x3f   : > { %s2401_s17 = scalar_lea.vmem %s2400_s16, 2048  ;;  %p2402_p6 = scmp.lt.s32.totalorder %s2645_s25, %s2400_s16 }
  0x40   : > { %p2397_p3 = pnand %p2395_p11, %p2351_p1  ;;  %p2403_p0 = scmp.lt.s32.totalorder %s2401_s17, %s2394_s9 }
  0x42   : > { %p2398_p8 = pneg %p2397_p3  ;;  %p2404_p2 = por %p2403_p0, %p2402_p6 }
  0x44   : > { %p2405_p4 = pnand %p2404_p2, %p2398_p8 }
  0x46   : > { %2408 = shalt.err (!%p2405_p4)
}
  0x47   : > { %s3071_s14 = smov 128   ;;  %268 = sbr.rel (%p2632_p12) target bundleno = 882 (0x372), region = 40 }
  0x48   : > { %2271 = dma.hbm_to_vmem [thread:$0]  (!%p2593_p13), %s2641_s13, 1024, %s2645_s25, %s229_s12, %s3071_s14, %s3071_s14, %s2483_s26  }
  0x49   : > { %s2679_s10 = sand.u32 (!%p2632_p12), 1, %s2471_s19   ;;  %p3072_p6 = scmp.ne.s32.totalorder (!%p2632_p12), %s3066_s29, 0 }
  0x4a   : > { %s2109_s8 = sshll.u32 (!%p2632_p12), %s2679_s10, 6  ;;  %s271_s11 = scalar_lea.sflag (!%p2632_p12), [#allocation3], %s2679_s10 }
  0x4b   : > { %s2683_s15 = scalar_lea.vmem (!%p2632_p12), [#allocation2], %s2109_s8 }
  0x4e   : > { %2454 = dma.done.wait (%p3072_p6), %s271_s11, 1024  }
  0x4f   : > { %2456 = vsyncadd (%p3072_p6), %s271_s11, 4294966272  ;;  %s280_s7 = scalar_lea.sflag [#allocation6], %s2679_s10  ;;  %s2690_s26 = scalar_lea.vmem [#allocation5], %s2109_s8 }
  0x50   : > { %2458 = dma.done.wait (%p3072_p6), %s280_s7, 1024  }
  0x51   : > { %2460 = vsyncadd (%p3072_p6), %s280_s7, 4294966272  ;;  %s2112_s28 = sshll.u32 %s2540_s22, 3  ;;  %v2485_v0 = vmov 0.0   ;;  %vm2486_vm0 = vmmov 0   ;;  %vm388_vm1 = vcmask 261120   ;;  %v356_v1 = vld [vmem:[%s2683_s15] sm:$0xff]  ;;  %v1021_v18 = vlaneseq }
  0x52   : > { %2179 = vmatprep.subr.mxu0 %v2485_v0  ;;  %2181 = vmatprep.mubr.msk.f32.mxu0 %vm2486_vm0, %v2485_v0  ;;  %p330_p13 = scmp.lt.s32.totalorder %s2112_s28, 15  ;;  %v357_v2 = vld [vmem:[%s2683_s15 + $0x8] sm:$0xff]  ;;  %v358_v5 = vld [vmem:[%s2683_s15 + $0x10] sm:$0xff]  ;;  %v359_v6 = vld [vmem:[%s2683_s15 + $0x18] sm:$0xff]  ;;  %v2487_v17 = vmov 0   ;;  %vm1077_vm9 = vcmask 64512  }
  0x53   : > { %2184 = vmatprep.subr.mxu1 %v2485_v0  ;;  %2186 = vmatprep.mubr.msk.f32.mxu1 %vm2486_vm0, %v2485_v0  ;;  %v360_v8 = vld [vmem:[%s2683_s15 + $0x20] sm:$0xff]  ;;  %v361_v10 = vld [vmem:[%s2683_s15 + $0x28] sm:$0xff]  ;;  %v362_v12 = vld [vmem:[%s2683_s15 + $0x30] sm:$0xff]  ;;  %v1022_v20 = vshrl.u32 %v1021_v18, 7  ;;  %s2111_s11 = sshll.u32 %s2679_s10, 3  ;;  %s1960_s25 = scalar_lea.sflag [#allocation4], %s2679_s10 }
  0x54   : > { %s3103_s28 = smov (!%p330_p13, %s2112_s28), 15  ;;  %2180 = vmatpush3.xpose.msk.msra.mxu0 %vm388_vm1, %v356_v1  ;;  %2185 = vmatpush3.xpose.msk.msra.mxu1 %vm388_vm1, %v357_v2  ;;  %v363_v14 = vld [vmem:[%s2683_s15 + $0x38] sm:$0xff]  ;;  %s2142_s15 = sshll.u32 %s2540_s22, 7 }
  0x55   : > { %s2113_s29 = sshll.u32 %s3103_s28, 3  ;;  %2189 = vmatprep.subr.mxu0 %v2485_v0  ;;  %2194 = vmatprep.subr.mxu1 %v2485_v0  ;;  %s346_s16 = scalar_lea.vmem %s3060_s4, %s3103_s28  ;;  %v2775_v23 = vsub.s32 0, %v1022_v20 }
  0x56   : > { %s2711_s12 = scalar_lea.vmem %s3056_s0, %s2113_s29  ;;  %2316 = vset.pattern.permute.xlu1 %v2487_v17  ;;  %2315 = vset.pattern.permute.xlu0 %v2487_v17  ;;  %v380_v19 = vld [vmem:[%s346_s16] sm:$0x1]  ;;  %v381_v21 = vld [vmem:[%s346_s16 + $0x1] sm:$0x1]  ;;  %v382_v22 = vld [vmem:[%s346_s16 + $0x2] sm:$0x1]  ;;  %s341_s8 = scalar_lea.vmem %s3059_s3, %s2113_s29 }
  0x57   : > { %v348_v3 = vld [vmem:[%s2711_s12] sm:$0xff]  ;;  %v349_v4 = vld [vmem:[%s2711_s12 + $0x8] sm:$0xff]  ;;  %v350_v7 = vld [vmem:[%s2711_s12 + $0x10] sm:$0xff]  ;;  %vm997_vm2 = vcmp.le.f32.partialorder %v380_v19, 0.0  ;;  %vm998_vm3 = vcmp.le.f32.partialorder %v381_v21, 0.0  ;;  %vm999_vm4 = vcmp.le.f32.partialorder %v382_v22, 0.0  ;;  %s3011_s13 = scalar_lea.hbm %s3061_s5, %s2142_s15 }
  0x58   : > { %2182 = vmatmul.mubr.msk.f32.vlgmr.msra.gmra.mrb[0].mxu0 %vm388_vm1, %v348_v3  ;;  %2187 = vmatmul.mubr.msk.f32.vlgmr.msra.gmra.mrb[0].mxu1 %vm388_vm1, %v349_v4  ;;  %v351_v9 = vld [vmem:[%s2711_s12 + $0x18] sm:$0xff]  ;;  %v352_v11 = vld [vmem:[%s2711_s12 + $0x20] sm:$0xff]  ;;  %v353_v13 = vld [vmem:[%s2711_s12 + $0x28] sm:$0xff]  ;;  %v1013_v25 = vsel %vm997_vm2, 1, %v2487_v17  ;;  %v1014_v26 = vsel %vm998_vm3, 1, %v2487_v17  ;;  %v1015_v31 = vsel %vm999_vm4, 1, %v2487_v17 }
  0x59   : > { %2190 = vmatpush3.xpose.msk.msra.mxu0 %vm388_vm1, %v358_v5  ;;  %2191 = vmatprep.mubr.msk.f32.mxu0 %vm2486_vm0, %v2485_v0  ;;  %v354_v15 = vld [vmem:[%s2711_s12 + $0x30] sm:$0xff]  ;;  %v355_v16 = vld [vmem:[%s2711_s12 + $0x38] sm:$0xff]  ;;  %v383_v24 = vld [vmem:[%s346_s16 + $0x3] sm:$0x1]  ;;  %v1024_v28 = vrot.slane %v1013_v25, %v2775_v23  ;;  %v1028_v30 = vrot.slane %v1014_v26, %v2775_v23  ;;  %v1032_v35 = vrot.slane %v1015_v31, %v2775_v23  ;;  %s328_s7 = scalar_lea.vmem [#allocation7], %s2111_s11  ;;  %p3095_p12 = scmp.ne.s32.totalorder %s3067_s30, 0 }
  0x5a   : > { %2195 = vmatpush3.xpose.msk.msra.mxu1 %vm388_vm1, %v359_v6  ;;  %2199 = vmatprep.subr.mxu0 %v2485_v0  ;;  %vm1000_vm5 = vcmp.le.f32.partialorder %v383_v24, 0.0  ;;  %v384_v27 = vld [vmem:[%s346_s16 + $0x4] sm:$0x1]  ;;  %v385_v29 = vld [vmem:[%s346_s16 + $0x5] sm:$0x1]  ;;  %v365_v19 = vld [vmem:[%s2690_s26 + $0x8] sm:$0xff] }
  0x5b   : > { %2196 = vmatprep.mubr.msk.f32.mxu1 %vm2486_vm0, %v2485_v0  ;;  %2204 = vmatprep.subr.mxu1 %v2485_v0  ;;  %v1016_v32 = vsel %vm1000_vm5, 1, %v2487_v17  ;;  %vm1001_vm6 = vcmp.le.f32.partialorder %v384_v27, 0.0  ;;  %vm1002_vm7 = vcmp.le.f32.partialorder %v385_v29, 0.0  ;;  %v386_v33 = vld [vmem:[%s346_s16 + $0x6] sm:$0x1]  ;;  %vm2783_vm8 = vcmp.eq.s32.totalorder %v1024_v28, 1 }
  0x5c   : > { %2192 = vmatmul.mubr.msk.f32.vlgmr.msra.gmra.mrb[2].mxu0 %vm388_vm1, %v350_v7  ;;  %v387_v36 = vld [vmem:[%s346_s16 + $0x7] sm:$0x1]  ;;  %vm1054_vm10 = vcmp.eq.s32.totalorder %v1028_v30, 1  ;;  %v1036_v39 = vrot.slane %v1016_v32, %v2775_v23  ;;  %v1017_v40 = vsel %vm1001_vm6, 1, %v2487_v17  ;;  %v1018_v43 = vsel %vm1002_vm7, 1, %v2487_v17  ;;  %v373_v21 = vld [vmem:[%s341_s8 + $0x8] sm:$0xff] }
  0x5d   : > { %2200 = vmatpush3.xpose.msk.msra.mxu0 %vm388_vm1, %v360_v8  ;;  %2197 = vmatmul.mubr.msk.f32.vlgmr.msra.gmra.mrb[2].mxu1 %vm388_vm1, %v351_v9  ;;  %vm1003_vm13 = vcmp.le.f32.partialorder %v386_v33, 0.0  ;;  %vm1004_vm15 = vcmp.le.f32.partialorder %v387_v36, 0.0  ;;  %vm2805_vm3 = vcmp.eq.s32.totalorder %v1032_v35, 1  ;;  %v1040_v48 = vrot.slane %v1017_v40, %v2775_v23  ;;  %s2488_s22 = smov [#allocation7]  }
  0x5e   : > { %2201 = vmatprep.mubr.msk.f32.mxu0 %vm2486_vm0, %v2485_v0  ;;  %2205 = vmatpush3.xpose.msk.msra.mxu1 %vm388_vm1, %v361_v10  ;;  %vm1056_vm4 = vcmp.eq.s32.totalorder %v1036_v39, 1  ;;  %v1044_v51 = vrot.slane %v1018_v43, %v2775_v23  ;;  %v1019_v52 = vsel %vm1003_vm13, 1, %v2487_v17  ;;  %v1020_v56 = vsel %vm1004_vm15, 1, %v2487_v17  ;;  %s2413_s9 = sshll.u32 %s2488_s22, 4  ;;  %s2414_s9 = int_to_ptr.vmem [resolvable:$false] %s2413_s9 }
  0x5f   : > { %2209 = vmatprep.subr.mxu0 %v2485_v0  ;;  %2206 = vmatprep.mubr.msk.f32.mxu1 %vm2486_vm0, %v2485_v0  ;;  %v1048_v62 = vrot.slane %v1019_v52, %v2775_v23  ;;  %v1052_v3 = vrot.slane %v1020_v56, %v2775_v23  ;;  %s2415_s23 = scalar_lea.vmem %s2414_s9, 256 }
  0x60   : > { %2202 = vmatmul.mubr.msk.f32.vlgmr.msra.gmra.mrb[4].mxu0 %vm388_vm1, %v352_v11  ;;  %2214 = vmatprep.subr.mxu1 %v2485_v0 }
  0x61   : > { %2210 = vmatpush3.xpose.msk.msra.mxu0 %vm388_vm1, %v362_v12  ;;  %2207 = vmatmul.mubr.msk.f32.vlgmr.msra.gmra.mrb[4].mxu1 %vm388_vm1, %v353_v13 }
  0x62   : > { %2211 = vmatprep.mubr.msk.f32.mxu0 %vm2486_vm0, %v2485_v0  ;;  %2215 = vmatpush3.xpose.msk.msra.mxu1 %vm388_vm1, %v363_v14 }
  0x63   : > { %2216 = vmatprep.mubr.msk.f32.mxu1 %vm2486_vm0, %v2485_v0  ;;  %2219 = vmatprep.subr.mxu0 %v2485_v0 }
  0x64   : > { %2212 = vmatmul.mubr.msk.f32.vlgmr.msra.gmra.mrb[6].mxu0 %vm388_vm1, %v354_v15  ;;  %2224 = vmatprep.subr.mxu1 %v2485_v0 }
  0x65   : > { %2217 = vmatmul.mubr.msk.f32.vlgmr.msra.gmra.mrb[6].mxu1 %vm388_vm1, %v355_v16  ;;  %2221 = vmatprep.mubr.msk.f32.mxu0 %vm2486_vm0, %v2485_v0 }
  0x66   : > { %2226 = vmatprep.mubr.msk.f32.mxu1 %vm2486_vm0, %v2485_v0  ;;  %2225 = vmatpush3.msra.mxu1 %v365_v19 }
  0x67   : > { %2234 = vmatprep.subr.mxu1 %v2485_v0 }
 0x12b   : > { %v461_v37 = vpop.f32.mrb[0].mxu0  ;;  %v537_v38 = vpop.f32.mrb[0].mxu1 }
 0x12c   : > { %vm1005_vm11 = vcmp.ne.f32.partialorder %v461_v37, 0.0  ;;  %v2183_v41 = vpop.f32.mrb[1].mxu0  ;;  %vm1006_vm12 = vcmp.ne.f32.partialorder %v537_v38, 0.0  ;;  %v2188_v42 = vpop.f32.mrb[1].mxu1 }
 0x12d   : > { %vm2793_vm14 = vmand %vm1005_vm11, %vm2783_vm8  ;;  %vm1058_vm11 = vcmp.eq.s32.totalorder %v1044_v51, 1 }
 0x12e   : > { %v2799_v45 = vsel %vm2793_vm14, %v461_v37, -inf  ;;  %vm2801_vm2 = vmand %vm1006_vm12, %vm1054_vm10  ;;  %vm2831_vm10 = vcmp.eq.s32.totalorder %v1040_v48, 1 }
 0x12f   : > { %v613_v49 = vpop.f32.mrb[2].mxu0  ;;  %v1078_v50 = vsel %vm1077_vm9, %v2799_v45, -inf  ;;  %v2816_v55 = vsel %vm2801_vm2, %v537_v38, -inf }
 0x130   : > { %vm1007_vm5 = vcmp.ne.f32.partialorder %v613_v49, 0.0  ;;  %1079 = vmax.xlane.f32.xlu0 %v1078_v50  ;;  %v2193_v53 = vpop.f32.mrb[3].mxu0  ;;  %v689_v54 = vpop.f32.mrb[2].mxu1  ;;  %v1081_v1 = vsel %vm1077_vm9, %v2816_v55, -inf }
 0x131   : > { %vm1008_vm6 = vcmp.ne.f32.partialorder %v689_v54, 0.0  ;;  %v2198_v57 = vpop.f32.mrb[3].mxu1  ;;  %vm2821_vm7 = vmand %vm1007_vm5, %vm2805_vm3  ;;  %vm1060_vm5 = vcmp.eq.s32.totalorder %v1052_v3, 1 }
 0x132   : > { %v1071_v59 = vsel %vm2821_vm7, %v613_v49, -inf  ;;  %vm2827_vm8 = vmand %vm1008_vm6, %vm1056_vm4  ;;  %vm1059_vm4 = vcmp.eq.s32.totalorder %v1048_v62, 1 }
 0x133   : > { %v765_v63 = vpop.f32.mrb[4].mxu0  ;;  %v1084_v2 = vsel %vm1077_vm9, %v1071_v59, -inf  ;;  %v1072_v6 = vsel %vm2827_vm8, %v689_v54, -inf }
 0x134   : > { %vm1009_vm12 = vcmp.ne.f32.partialorder %v765_v63, 0.0  ;;  %1082 = vmax.xlane.f32.xlu0 %v1081_v1  ;;  %1085 = vmax.xlane.f32.xlu1 %v1084_v2  ;;  %v2203_v4 = vpop.f32.mrb[5].mxu0  ;;  %v841_v5 = vpop.f32.mrb[4].mxu1  ;;  %v1087_v12 = vsel %vm1077_vm9, %v1072_v6, -inf }
 0x135   : > { %vm1010_vm13 = vcmp.ne.f32.partialorder %v841_v5, 0.0  ;;  %v2208_v7 = vpop.f32.mrb[5].mxu1  ;;  %vm2844_vm15 = vmand %vm1009_vm12, %vm2831_vm10 }
 0x136   : > { %v1073_v9 = vsel %vm2844_vm15, %v765_v63, -inf  ;;  %vm2850_vm3 = vmand %vm1010_vm13, %vm1058_vm11 }
 0x137   : > { %v917_v11 = vpop.f32.mrb[6].mxu0  ;;  %v1090_v13 = vsel %vm1077_vm9, %v1073_v9, -inf  ;;  %v1074_v16 = vsel %vm2850_vm3, %v841_v5, -inf }
 0x138   : > { %vm1011_vm6 = vcmp.ne.f32.partialorder %v917_v11, 0.0  ;;  %1088 = vmax.xlane.f32.xlu1 %v1087_v12  ;;  %1091 = vmax.xlane.f32.xlu0 %v1090_v13  ;;  %v993_v14 = vpop.f32.mrb[6].mxu1  ;;  %v2213_v15 = vpop.f32.mrb[7].mxu0  ;;  %v1093_v22 = vsel %vm1077_vm9, %v1074_v16, -inf }
 0x139   : > { %vm1012_vm10 = vcmp.ne.f32.partialorder %v993_v14, 0.0  ;;  %v2218_v18 = vpop.f32.mrb[7].mxu1  ;;  %vm2858_vm11 = vmand %vm1011_vm6, %vm1059_vm4 }
 0x13a   : > { %v1075_v20 = vsel %vm2858_vm11, %v917_v11, -inf  ;;  %vm2864_vm12 = vmand %vm1012_vm10, %vm1060_vm5 }
 0x13b   : > { %v1096_v23 = vsel %vm1077_vm9, %v1075_v20, -inf  ;;  %v1076_v24 = vsel %vm2864_vm12, %v993_v14, -inf }
 0x13c   : > { %1094 = vmax.xlane.f32.xlu1 %v1093_v22  ;;  %1097 = vmax.xlane.f32.xlu0 %v1096_v23  ;;  %v1099_v25 = vsel %vm1077_vm9, %v1076_v24, -inf  ;;  %v364_v22 = vld [vmem:[%s2690_s26] sm:$0xff]  ;;  %v374_v23 = vld [vmem:[%s341_s8 + $0x10] sm:$0xff] }
 0x13d   : > { %2220 = vmatpush3.msra.mxu0 %v364_v22 }
 0x13e   : > { %2229 = vmatprep.subr.mxu0 %v2485_v0 }
 0x140   : > { %1100 = vmax.xlane.f32.xlu1 %v1099_v25  ;;  %v375_v25 = vld [vmem:[%s341_s8 + $0x18] sm:$0xff] }
 0x1bd   : > { %v1080_v26 = vpop.xlane.xlu0 %1079 }
 0x1be   : > { %vm1102_vm13 = vcmp.eq.f32.partialorder %v1080_v26, -inf }
 0x1bf   : > { %v1110_v27 = vsel %vm1102_vm13, 0.0, %v1080_v26  ;;  %v372_v26 = vld [vmem:[%s341_s8] sm:$0xff] }
 0x1c0   : > { %v1118_v28 = vsub.f32 %v2799_v45, %v1110_v27 }
 0x1c1   : > { %v1083_v29 = vpop.xlane.xlu0 %1082  ;;  %v1086_v30 = vpop.xlane.xlu1 %1085 }
 0x1c2   : > { %v1126_v31 = vmul.f32 1.442695, %v1118_v28  ;;  %vm1103_vm4 = vcmp.eq.f32.partialorder %v1083_v29, -inf  ;;  %vm1104_vm5 = vcmp.eq.f32.partialorder %v1086_v30, -inf }
 0x1c3   : > { %v1111_v32 = vsel %vm1103_vm4, 0.0, %v1083_v29  ;;  %v1112_v33 = vsel %vm1104_vm5, 0.0, %v1086_v30  ;;  %v376_v29 = vld [vmem:[%s341_s8 + $0x20] sm:$0xff] }
 0x1c4   : > { %2317 = vpow2.f32 %v1126_v31  ;;  %v1119_v34 = vsub.f32 %v2816_v55, %v1111_v32  ;;  %v1120_v35 = vsub.f32 %v1071_v59, %v1112_v33  ;;  %v377_v31 = vld [vmem:[%s341_s8 + $0x28] sm:$0xff]  ;;  %v378_v33 = vld [vmem:[%s341_s8 + $0x30] sm:$0xff] }
 0x1c5   : > { %v1089_v36 = vpop.xlane.xlu1 %1088  ;;  %v1092_v37 = vpop.xlane.xlu0 %1091 }
 0x1c6   : > { %v1128_v38 = vmul.f32 1.442695, %v1119_v34  ;;  %v1130_v39 = vmul.f32 1.442695, %v1120_v35  ;;  %vm1105_vm6 = vcmp.eq.f32.partialorder %v1089_v36, -inf  ;;  %vm1106_vm10 = vcmp.eq.f32.partialorder %v1092_v37, -inf }
 0x1c7   : > { %v1113_v40 = vsel %vm1105_vm6, 0.0, %v1089_v36  ;;  %v1114_v41 = vsel %vm1106_vm10, 0.0, %v1092_v37  ;;  %v379_v35 = vld [vmem:[%s341_s8 + $0x38] sm:$0xff] }
 0x1c8   : > { %2319 = vpow2.f32 %v1128_v38  ;;  %v1121_v42 = vsub.f32 %v1072_v6, %v1113_v40  ;;  %v1122_v43 = vsub.f32 %v1073_v9, %v1114_v41 }
 0x1c9   : > { %2321 = vpow2.f32 %v1130_v39  ;;  %v1095_v45 = vpop.xlane.xlu1 %1094  ;;  %v1098_v47 = vpop.xlane.xlu0 %1097 }
 0x1ca   : > { %v1132_v48 = vmul.f32 1.442695, %v1121_v42  ;;  %v1134_v49 = vmul.f32 1.442695, %v1122_v43  ;;  %vm1107_vm13 = vcmp.eq.f32.partialorder %v1095_v45, -inf  ;;  %vm1108_vm4 = vcmp.eq.f32.partialorder %v1098_v47, -inf }
 0x1cb   : > { %v1115_v50 = vsel %vm1107_vm13, 0.0, %v1095_v45  ;;  %v1116_v51 = vsel %vm1108_vm4, 0.0, %v1098_v47 }
 0x1cc   : > { %2323 = vpow2.f32 %v1132_v48  ;;  %v1123_v52 = vsub.f32 %v1074_v16, %v1115_v50  ;;  %v1124_v53 = vsub.f32 %v1075_v20, %v1116_v51 }
 0x1cd   : > { %2325 = vpow2.f32 %v1134_v49  ;;  %v1101_v54 = vpop.xlane.xlu1 %1100 }
 0x1ce   : > { %v2318_v55 = vpop.eup %2317  ;;  %v1136_v56 = vmul.f32 1.442695, %v1123_v52  ;;  %v1138_v57 = vmul.f32 1.442695, %v1124_v53  ;;  %vm1109_vm5 = vcmp.eq.f32.partialorder %v1101_v54, -inf }
 0x1cf   : > { %v1117_v59 = vsel %vm1109_vm5, 0.0, %v1101_v54  ;;  %v2877_v61 = vsel %vm2793_vm14, %v2318_v55, 0.0  ;;  %vm1815_vm14 = vcmp.gt.f32.partialorder %v373_v21, 0.0  ;;  %v366_v55 = vld [vmem:[%s2690_s26 + $0x10] sm:$0xff] }
 0x1d0   : > { %2327 = vpow2.f32 %v1136_v56  ;;  %v1125_v62 = vsub.f32 %v1076_v24, %v1117_v59  ;;  %v1150_v63 = vsel %vm1077_vm9, %v2877_v61, 0.0  ;;  %v1823_v24 = vsel %vm1815_vm14, 1, %v2487_v17 }
 0x1d1   : > { %2329 = vpow2.f32 %v1138_v57  ;;  %1151 = vadd.xlane.f32.xlu0 %v1150_v63 }
 0x1d2   : > { %v2320_v1 = vpop.eup %2319  ;;  %v1140_v2 = vmul.f32 1.442695, %v1125_v62 }
 0x1d3   : > { %v2322_v3 = vpop.eup %2321  ;;  %v2883_v4 = vsel %vm2801_vm2, %v2320_v1, 0.0  ;;  %vm1816_vm2 = vcmp.gt.f32.partialorder %v374_v23, 0.0 }
 0x1d4   : > { %2331 = vpow2.f32 %v1140_v2  ;;  %v1153_v44 = vsel %vm1077_vm9, %v2883_v4, 0.0  ;;  %v2889_v5 = vsel %vm2821_vm7, %v2322_v3, 0.0  ;;  %v1824_v27 = vsel %vm1816_vm2, 1, %v2487_v17  ;;  %v367_v2 = vld [vmem:[%s2690_s26 + $0x18] sm:$0xff] }
 0x1d5   : > { %1154 = vadd.xlane.f32.xlu1 %v1153_v44  ;;  %v1156_v6 = vsel %vm1077_vm9, %v2889_v5, 0.0  ;;  %vm1814_vm7 = vcmp.gt.f32.partialorder %v372_v26, 0.0  ;;  %v368_v44 = vld [vmem:[%s2690_s26 + $0x20] sm:$0xff] }
 0x1d6   : > { %v2324_v7 = vpop.eup %2323  ;;  %1157 = vadd.xlane.f32.xlu0 %v1156_v6  ;;  %v1822_v28 = vsel %vm1814_vm7, 1, %v2487_v17 }
 0x1d7   : > { %v2326_v9 = vpop.eup %2325  ;;  %v2895_v46 = vsel %vm2827_vm8, %v2324_v7, 0.0  ;;  %vm1817_vm8 = vcmp.gt.f32.partialorder %v375_v25, 0.0 }
 0x1d8   : > { %v1159_v11 = vsel %vm1077_vm9, %v2895_v46, 0.0  ;;  %v2901_v12 = vsel %vm2844_vm15, %v2326_v9, 0.0  ;;  %v1825_v30 = vsel %vm1817_vm8, 1, %v2487_v17  ;;  %vm1818_vm15 = vcmp.gt.f32.partialorder %v376_v29, 0.0 }
 0x1d9   : > { %1160 = vadd.xlane.f32.xlu1 %v1159_v11  ;;  %v1162_v58 = vsel %vm1077_vm9, %v2901_v12, 0.0  ;;  %v1826_v32 = vsel %vm1818_vm15, 1, %v2487_v17  ;;  %v369_v11 = vld [vmem:[%s2690_s26 + $0x28] sm:$0xff] }
 0x1da   : > { %v2328_v13 = vpop.eup %2327  ;;  %1163 = vadd.xlane.f32.xlu0 %v1162_v58 }
 0x1db   : > { %v2330_v14 = vpop.eup %2329  ;;  %v2907_v60 = vsel %vm2850_vm3, %v2328_v13, 0.0  ;;  %vm1819_vm3 = vcmp.gt.f32.partialorder %v377_v31, 0.0  ;;  %v370_v13 = vld [vmem:[%s2690_s26 + $0x30] sm:$0xff] }
 0x1dc   : > { %v1165_v15 = vsel %vm1077_vm9, %v2907_v60, 0.0  ;;  %v2913_v8 = vsel %vm2858_vm11, %v2330_v14, 0.0  ;;  %v1827_v34 = vsel %vm1819_vm3, 1, %v2487_v17  ;;  %vm1820_vm11 = vcmp.gt.f32.partialorder %v378_v33, 0.0 }
 0x1dd   : > { %1166 = vadd.xlane.f32.xlu1 %v1165_v15  ;;  %v1168_v16 = vsel %vm1077_vm9, %v2913_v8, 0.0  ;;  %v1828_v36 = vsel %vm1820_vm11, 1, %v2487_v17 }
 0x1de   : > { %v2332_v18 = vpop.eup %2331  ;;  %1169 = vadd.xlane.f32.xlu0 %v1168_v16 }
 0x1df   : > { %v2919_v20 = vsel %vm2864_vm12, %v2332_v18, 0.0  ;;  %vm1821_vm12 = vcmp.gt.f32.partialorder %v379_v35, 0.0  ;;  %v371_v18 = vld [vmem:[%s2690_s26 + $0x38] sm:$0xff]  ;;  %s1973_s26 = sshll.u32 %s328_s7, 4  ;;  %s3013_s26 = int_to_ptr.vmem [resolvable:$true] %s1973_s26 }
 0x1e0   : > { %v1171_v10 = vsel %vm1077_vm9, %v2919_v20, 0.0  ;;  %v1829_v37 = vsel %vm1821_vm12, 1, %v2487_v17  ;;  %s2409_s12 = scalar_lea.vmem %s3013_s26, 128  ;;  %p2416_p7 = scmp.lt.s32.totalorder %s3013_s26, %s2414_s9 }
 0x1e1   : > { %1172 = vadd.xlane.f32.xlu1 %v1171_v10  ;;  %p2410_p1 = scmp.ne.s32.totalorder %s3013_s26, %s2409_s12  ;;  %p2417_p9 = scmp.lt.s32.totalorder %s2415_s23, %s2409_s12 }
 0x1e3   : > { %p2411_p10 = pnand %p2410_p1, %p3095_p12  ;;  %p2418_p11 = por %p2417_p9, %p2416_p7 }
 0x1e5   : > { %p2412_p5 = pneg %p2411_p10 }
 0x1e7   : > { %p2419_p3 = pnand %p2418_p11, %p2412_p5 }
 0x1f2   : > { %1834 = vperm.xlu1 %2316, %v1823_v24  }
 0x1f4   : > { %1831 = vperm.xlu0 %2315, %v1822_v28  }
 0x1f6   : > { %1837 = vperm.xlu1 %2316, %v1824_v27  }
 0x1fa   : > { %1840 = vperm.xlu1 %2316, %v1825_v30  }
 0x1fe   : > { %1843 = vperm.xlu1 %2316, %v1826_v32  }
 0x202   : > { %1846 = vperm.xlu1 %2316, %v1827_v34  }
 0x206   : > { %1849 = vperm.xlu1 %2316, %v1828_v36  }
 0x20a   : > { %1852 = vperm.xlu1 %2316, %v1829_v37  }
 0x25e   : > { %v1152_v38 = vpop.xlane.xlu0 %1151 }
 0x25f   : > { %vm1174_vm6 = vcmp.gt.f32.partialorder %v1152_v38, 0.0 }
 0x260   : > { %v1182_v39 = vsel %vm1174_vm6, %v1152_v38, 1.0 }
 0x261   : > { %2333 = vrcp.f32 %v1182_v39 }
 0x262   : > { %v1155_v40 = vpop.xlane.xlu1 %1154 }
 0x263   : > { %vm1175_vm10 = vcmp.gt.f32.partialorder %v1155_v40, 0.0  ;;  %v1158_v41 = vpop.xlane.xlu0 %1157 }
 0x264   : > { %v1183_v42 = vsel %vm1175_vm10, %v1155_v40, 1.0  ;;  %vm1176_vm13 = vcmp.gt.f32.partialorder %v1158_v41, 0.0 }
 0x265   : > { %2335 = vrcp.f32 %v1183_v42  ;;  %v1184_v43 = vsel %vm1176_vm13, %v1158_v41, 1.0 }
 0x266   : > { %2337 = vrcp.f32 %v1184_v43  ;;  %v1161_v45 = vpop.xlane.xlu1 %1160 }
 0x267   : > { %vm1177_vm4 = vcmp.gt.f32.partialorder %v1161_v45, 0.0  ;;  %v1164_v17 = vpop.xlane.xlu0 %1163 }
 0x268   : > { %v1185_v47 = vsel %vm1177_vm4, %v1161_v45, 1.0  ;;  %vm1178_vm5 = vcmp.gt.f32.partialorder %v1164_v17, 0.0 }
 0x269   : > { %2339 = vrcp.f32 %v1185_v47  ;;  %v1186_v48 = vsel %vm1178_vm5, %v1164_v17, 1.0 }
 0x26a   : > { %2341 = vrcp.f32 %v1186_v48  ;;  %v1167_v49 = vpop.xlane.xlu1 %1166 }
 0x26b   : > { %v2334_v50 = vpop.eup %2333  ;;  %vm1179_vm14 = vcmp.gt.f32.partialorder %v1167_v49, 0.0  ;;  %v1170_v51 = vpop.xlane.xlu0 %1169 }
 0x26c   : > { %v1191_v52 = vmul.f32 %v2334_v50, %v2877_v61  ;;  %v1187_v53 = vsel %vm1179_vm14, %v1167_v49, 1.0  ;;  %vm1180_vm2 = vcmp.gt.f32.partialorder %v1170_v51, 0.0 }
 0x26d   : > { %2343 = vrcp.f32 %v1187_v53  ;;  %v1188_v54 = vsel %vm1180_vm2, %v1170_v51, 1.0 }
 0x26e   : > { %v1222_v56 = vsel %vm1174_vm6, %v1191_v52, 0.0  ;;  %2345 = vrcp.f32 %v1188_v54  ;;  %v1173_v57 = vpop.xlane.xlu1 %1172 }
 0x26f   : > { %v2336_v59 = vpop.eup %2335  ;;  %vm1181_vm7 = vcmp.gt.f32.partialorder %v1173_v57, 0.0  ;;  %2222 = vmatmul.mubr.msk.f32.vlgmr.msra.gmra.mrb[8].mxu0 %vm1077_vm9, %v1222_v56 }
 0x270   : > { %v2338_v62 = vpop.eup %2337  ;;  %v1193_v61 = vmul.f32 %v2336_v59, %v2883_v4  ;;  %v1189_v63 = vsel %vm1181_vm7, %v1173_v57, 1.0  ;;  %2230 = vmatpush3.msra.mxu0 %v366_v55  ;;  %2231 = vmatprep.mubr.msk.f32.mxu0 %vm2486_vm0, %v2485_v0 }
 0x271   : > { %v1195_v1 = vmul.f32 %v2338_v62, %v2889_v5  ;;  %2347 = vrcp.f32 %v1189_v63  ;;  %2239 = vmatprep.subr.mxu0 %v2485_v0 }
 0x272   : > { %v1223_v3 = vsel %vm1175_vm10, %v1193_v61, 0.0  ;;  %v1835_v21 = vpop.permute.xlu1 %1834  ;;  %vm1943_vm10 = vcmask 1041409  }
 0x273   : > { %v2340_v6 = vpop.eup %2339  ;;  %v1224_v4 = vsel %vm1176_vm13, %v1195_v1, 0.0  ;;  %2227 = vmatmul.mubr.msk.f32.vlgmr.msra.gmra.mrb[8].mxu1 %vm1077_vm9, %v1223_v3  ;;  %v1832_v26 = vpop.permute.xlu0 %1831  ;;  %vm1855_vm15 = vcmp.eq.s32.totalorder %v1835_v21, 1  ;;  %vm1945_vm13 = vcmask 1042434  }
 0x274   : > { %v2342_v7 = vpop.eup %2341  ;;  %v1197_v9 = vmul.f32 %v2340_v6, %v2895_v46  ;;  %2232 = vmatmul.mubr.msk.f32.vlgmr.msra.gmra.mrb[10].mxu0 %vm1077_vm9, %v1224_v4  ;;  %2235 = vmatpush3.msra.mxu1 %v367_v2  ;;  %vm1854_vm8 = vcmp.eq.s32.totalorder %v1832_v26, 1 }
 0x275   : > { %v1199_v5 = vmul.f32 %v2342_v7, %v2901_v12  ;;  %2236 = vmatprep.mubr.msk.f32.mxu1 %vm2486_vm0, %v2485_v0  ;;  %2240 = vmatpush3.msra.mxu0 %v368_v44 }
 0x276   : > { %v1225_v58 = vsel %vm1177_vm4, %v1197_v9, 0.0  ;;  %2241 = vmatprep.mubr.msk.f32.mxu0 %vm2486_vm0, %v2485_v0  ;;  %2244 = vmatprep.subr.mxu1 %v2485_v0  ;;  %v1838_v23 = vpop.permute.xlu1 %1837  ;;  %vm1947_vm4 = vcmask 1043459  }
 0x277   : > { %v2344_v46 = vpop.eup %2343  ;;  %v1226_v14 = vsel %vm1178_vm5, %v1199_v5, 0.0  ;;  %2237 = vmatmul.mubr.msk.f32.vlgmr.msra.gmra.mrb[10].mxu1 %vm1077_vm9, %v1225_v58  ;;  %2249 = vmatprep.subr.mxu0 %v2485_v0  ;;  %vm1949_vm5 = vcmask 1044484  }
 0x278   : > { %v2346_v12 = vpop.eup %2345  ;;  %v1201_v15 = vmul.f32 %v2344_v46, %v2907_v60  ;;  %2242 = vmatmul.mubr.msk.f32.vlgmr.msra.gmra.mrb[12].mxu0 %vm1077_vm9, %v1226_v14  ;;  %2245 = vmatpush3.msra.mxu1 %v369_v11 }
 0x279   : > { %v1203_v16 = vmul.f32 %v2346_v12, %v2913_v8  ;;  %2246 = vmatprep.mubr.msk.f32.mxu1 %vm2486_vm0, %v2485_v0  ;;  %2250 = vmatpush3.msra.mxu0 %v370_v13 }
 0x27a   : > { %v1227_v10 = vsel %vm1179_vm14, %v1201_v15, 0.0  ;;  %2251 = vmatprep.mubr.msk.f32.mxu0 %vm2486_vm0, %v2485_v0  ;;  %2254 = vmatprep.subr.mxu1 %v2485_v0  ;;  %v1841_v24 = vpop.permute.xlu1 %1840  ;;  %vm1951_vm14 = vcmask 1045509  }
 0x27b   : > { %v2348_v22 = vpop.eup %2347  ;;  %v1228_v60 = vsel %vm1180_vm2, %v1203_v16, 0.0  ;;  %2247 = vmatmul.mubr.msk.f32.vlgmr.msra.gmra.mrb[12].mxu1 %vm1077_vm9, %v1227_v10  ;;  %vm1953_vm2 = vcmask 1046534  }
 0x27c   : > { %v1205_v19 = vmul.f32 %v2348_v22, %v2919_v20  ;;  %2252 = vmatmul.mubr.msk.f32.vlgmr.msra.gmra.mrb[14].mxu0 %vm1077_vm9, %v1228_v60  ;;  %2255 = vmatpush3.msra.mxu1 %v371_v18 }
 0x27d   : > { %2256 = vmatprep.mubr.msk.f32.mxu1 %vm2486_vm0, %v2485_v0  ;;  %vm1856_vm0 = vcmp.eq.s32.totalorder %v1838_v23, 1 }
 0x27e   : > { %v1229_v8 = vsel %vm1181_vm7, %v1205_v19, 0.0  ;;  %v1844_v25 = vpop.permute.xlu1 %1843  ;;  %vm1955_vm7 = vcmask 1047559  }
 0x27f   : > { %2257 = vmatmul.mubr.msk.f32.vlgmr.msra.gmra.mrb[14].mxu1 %vm1077_vm9, %v1229_v8  ;;  %vm1857_vm9 = vcmp.eq.s32.totalorder %v1841_v24, 1  ;;  %vm1858_vm3 = vcmp.eq.s32.totalorder %v1844_v25, 1 }
 0x282   : > { %v1847_v27 = vpop.permute.xlu1 %1846 }
 0x283   : > { %vm1859_vm11 = vcmp.eq.s32.totalorder %v1847_v27, 1 }
 0x286   : > { %v1850_v30 = vpop.permute.xlu1 %1849 }
 0x287   : > { %vm1860_vm12 = vcmp.eq.s32.totalorder %v1850_v30, 1 }
 0x28a   : > { %v1853_v43 = vpop.permute.xlu1 %1852 }
 0x28b   : > { %vm1861_vm6 = vcmp.eq.s32.totalorder %v1853_v43, 1 }
 0x342   : > { %v1299_v28 = vpop.f32.mrb[8].mxu0 }
 0x343   : > { %v1862_v29 = vsel %vm1854_vm8, %v1299_v28, 0.0  ;;  %v2223_v20 = vpop.f32.mrb[9].mxu0 }
 0x344   : > { %v1870_v31 = vsel %vm388_vm1, %v1862_v29, 0.0 }
 0x345   : > { %v1871_v32 = vrot.slane %v1870_v31, 4 }
 0x346   : > { %v1372_v0 = vpop.f32.mrb[8].mxu1 }
 0x347   : > { %v1872_v33 = vadd.f32 %v1871_v32, %v1870_v31  ;;  %v1863_v34 = vsel %vm1855_vm15, %v1372_v0, 0.0  ;;  %v1445_v35 = vpop.f32.mrb[10].mxu0  ;;  %v2228_v36 = vpop.f32.mrb[9].mxu1 }
 0x348   : > { %v1877_v37 = vsel %vm388_vm1, %v1863_v34, 0.0  ;;  %v1864_v38 = vsel %vm1856_vm0, %v1445_v35, 0.0  ;;  %v2233_v39 = vpop.f32.mrb[11].mxu0 }
 0x349   : > { %v1873_v40 = vrot.slane %v1872_v33, 2  ;;  %v1878_v41 = vrot.slane %v1877_v37, 4  ;;  %v1884_v42 = vsel %vm388_vm1, %v1864_v38, 0.0 }
 0x34a   : > { %v1885_v45 = vrot.slane %v1884_v42, 4  ;;  %v1518_v17 = vpop.f32.mrb[10].mxu1 }
 0x34b   : > { %v1874_v47 = vadd.f32 %v1873_v40, %v1872_v33  ;;  %v1879_v48 = vadd.f32 %v1878_v41, %v1877_v37  ;;  %v1865_v49 = vsel %vm1857_vm9, %v1518_v17, 0.0  ;;  %v1591_v50 = vpop.f32.mrb[12].mxu0  ;;  %v2238_v51 = vpop.f32.mrb[11].mxu1 }
 0x34c   : > { %v1886_v52 = vadd.f32 %v1885_v45, %v1884_v42  ;;  %v1891_v53 = vsel %vm388_vm1, %v1865_v49, 0.0  ;;  %v1866_v54 = vsel %vm1858_vm3, %v1591_v50, 0.0  ;;  %v2243_v55 = vpop.f32.mrb[13].mxu0 }
 0x34d   : > { %v1875_v56 = vrot.slane %v1874_v47, 1  ;;  %v1880_v57 = vrot.slane %v1879_v48, 2  ;;  %v1892_v59 = vrot.slane %v1891_v53, 4  ;;  %v1898_v62 = vsel %vm388_vm1, %v1866_v54, 0.0 }
 0x34e   : > { %v1887_v61 = vrot.slane %v1886_v52, 2  ;;  %v1899_v63 = vrot.slane %v1898_v62, 4  ;;  %v1664_v1 = vpop.f32.mrb[12].mxu1 }
 0x34f   : > { %v1876_v2 = vadd.f32 %v1875_v56, %v1874_v47  ;;  %v1881_v3 = vadd.f32 %v1880_v57, %v1879_v48  ;;  %v1893_v44 = vadd.f32 %v1892_v59, %v1891_v53  ;;  %v1867_v6 = vsel %vm1859_vm11, %v1664_v1, 0.0  ;;  %v1737_v4 = vpop.f32.mrb[14].mxu0  ;;  %v2248_v7 = vpop.f32.mrb[13].mxu1 }
 0x350   : > { %v1888_v9 = vadd.f32 %v1887_v61, %v1886_v52  ;;  %v1900_v5 = vadd.f32 %v1899_v63, %v1898_v62  ;;  %v1905_v11 = vsel %vm388_vm1, %v1867_v6, 0.0  ;;  %v1868_v58 = vsel %vm1860_vm12, %v1737_v4, 0.0  ;;  %v2253_v13 = vpop.f32.mrb[15].mxu0 }
 0x351   : > { %v1882_v46 = vrot.slane %v1881_v3, 1  ;;  %v1894_v14 = vrot.slane %v1893_v44, 2  ;;  %v1906_v12 = vrot.slane %v1905_v11, 4  ;;  %v1912_v18 = vsel %vm388_vm1, %v1868_v58, 0.0 }
 0x352   : > { %v1889_v15 = vrot.slane %v1888_v9, 1  ;;  %v1901_v16 = vrot.slane %v1900_v5, 2  ;;  %v1810_v10 = vpop.f32.mrb[14].mxu1  ;;  %v1913_v8 = vrot.slane %v1912_v18, 4  ;;  %v1927_v23 = vmul.f32 0.125, %v1876_v2 }
 0x353   : > { %v1883_v22 = vadd.f32 %v1882_v46, %v1881_v3  ;;  %v1895_v60 = vadd.f32 %v1894_v14, %v1893_v44  ;;  %v1907_v19 = vadd.f32 %v1906_v12, %v1905_v11  ;;  %v2258_v21 = vpop.f32.mrb[15].mxu1  ;;  %v1869_v26 = vsel %vm1861_vm6, %v1810_v10, 0.0 }
 0x354   : > { %v1890_v24 = vadd.f32 %v1889_v15, %v1888_v9  ;;  %v1902_v25 = vadd.f32 %v1901_v16, %v1900_v5  ;;  %v1914_v20 = vadd.f32 %v1913_v8, %v1912_v18  ;;  %v1919_v32 = vsel %vm388_vm1, %v1869_v26, 0.0 }
 0x355   : > { %v1928_v27 = vmul.f32 0.125, %v1883_v22  ;;  %v1896_v28 = vrot.slane %v1895_v60, 1  ;;  %v1908_v29 = vrot.slane %v1907_v19, 2  ;;  %v1920_v38 = vrot.slane %v1919_v32, 4 }
 0x356   : > { %v1929_v30 = vmul.f32 0.125, %v1890_v24  ;;  %v1903_v31 = vrot.slane %v1902_v25, 1  ;;  %v1915_v35 = vrot.slane %v1914_v20, 2 }
 0x357   : > { %v1944_v0 = vsel %vm1943_vm10, %v1928_v27, %v1927_v23  ;;  %v1897_v33 = vadd.f32 %v1896_v28, %v1895_v60  ;;  %v1909_v34 = vadd.f32 %v1908_v29, %v1907_v19  ;;  %v1921_v43 = vadd.f32 %v1920_v38, %v1919_v32 }
 0x358   : > { %v1946_v36 = vsel %vm1945_vm13, %v1929_v30, %v1944_v0  ;;  %v1904_v37 = vadd.f32 %v1903_v31, %v1902_v25  ;;  %v1916_v41 = vadd.f32 %v1915_v35, %v1914_v20 }
 0x359   : > { %v1930_v39 = vmul.f32 0.125, %v1897_v33  ;;  %v1910_v40 = vrot.slane %v1909_v34, 1  ;;  %v1922_v49 = vrot.slane %v1921_v43, 2 }
 0x35a   : > { %v1931_v42 = vmul.f32 0.125, %v1904_v37  ;;  %v1917_v47 = vrot.slane %v1916_v41, 1 }
 0x35b   : > { %v1948_v45 = vsel %vm1947_vm4, %v1930_v39, %v1946_v36  ;;  %v1911_v17 = vadd.f32 %v1910_v40, %v1909_v34  ;;  %v1923_v52 = vadd.f32 %v1922_v49, %v1921_v43 }
 0x35c   : > { %v1950_v48 = vsel %vm1949_vm5, %v1931_v42, %v1948_v45  ;;  %v1918_v51 = vadd.f32 %v1917_v47, %v1916_v41 }
 0x35d   : > { %v1932_v50 = vmul.f32 0.125, %v1911_v17  ;;  %v1924_v55 = vrot.slane %v1923_v52, 1 }
 0x35e   : > { %v1933_v54 = vmul.f32 0.125, %v1918_v51 }
 0x35f   : > { %v1952_v53 = vsel %vm1951_vm14, %v1932_v50, %v1950_v48  ;;  %v1925_v57 = vadd.f32 %v1924_v55, %v1923_v52 }
 0x360   : > { %v1954_v56 = vsel %vm1953_vm2, %v1933_v54, %v1952_v53 }
 0x361   : > { %v1934_v59 = vmul.f32 0.125, %v1925_v57 }
 0x363   : > { %v1956_v62 = vsel %vm1955_vm7, %v1934_v59, %v1954_v56 }
 0x364   : > { %1958 = vst.msk [vmem:[%s328_s7] sm:$0xff] %vm388_vm1, %v1956_v62 }
 0x365   : > { %2422 = shalt.err (!%p2419_p3)
}
 0x366   : > { %s2423_s10 = scalar_lea.hbm %s3011_s13, 128  ;;  %s2427_s14 = scalar_lea.hbm %s3061_s5, 256 }
 0x367   : > { %p2424_p8 = scmp.ne.s32.totalorder %s3011_s13, %s2423_s10  ;;  %p2428_p4 = scmp.lt.u32.totalorder %s3011_s13, %s3061_s5 }
 0x368   : > { %p2429_p6 = scmp.lt.u32.totalorder %s2427_s14, %s2423_s10  ;;  %p2431_p1 = scmp.lt.u32.totalorder %s2423_s10, %s3011_s13 }
 0x369   : > { %p2425_p0 = pnand %p2424_p8, %p3095_p12 }
 0x36a   : > { %p2430_p13 = por %p2429_p6, %p2428_p4 }
 0x36b   : > { %p2426_p2 = pneg %p2425_p0 }
 0x36c   : > { %p2432_p10 = por %p2431_p1, %p2430_p13 }
 0x36e   : > { %p2433_p5 = pnand %p2432_p10, %p2426_p2 }
 0x370   : > { %2436 = shalt.err (!%p2433_p5)
}
 0x371   : > { %2263 = dma.vmem_to_hbm [thread:$0]  (%p3095_p12), %s3013_s26, 128, %s3011_s13, %s1960_s25  }
 0x372 PF: > { %s1985_s15 = sand.u32 1, %s2467_s18   ;;  %p3096_p7 = scmp.ne.s32.totalorder %s3068_s6, 0 }
 0x373   : > { %p3097_p9 = scmp.ge.s32.totalorder %s2479_s21, 2  ;;  %s1986_s7 = scalar_lea.sflag [#allocation4], %s1985_s15 }
 0x375   : > { %p2273_p11 = pnand %p3097_p9, %p3096_p7 }
 0x377   : > { %2462 = dma.done.wait (!%p2273_p11), %s1986_s7, 128  }
 0x378   : > { %2464 = vsyncadd (!%p2273_p11), %s1986_s7, 4294967168  ;;  %p21_p3 = scmp.ge.s32.totalorder %s2544_s24, 4   ;;  %s3098_s18 = smov %s2471_s19 }
 0x379   : > { %s3099_s19 = smov %s2475_s20  ;;  %s3100_s20 = smov %s2556_s27 }
 0x37a   : > { %s3101_s21 = smov %s2544_s24  ;;  %23 = sbr.rel (!%p21_p3) target bundleno = 7 (0x7), region = 107 }
 0x381   :  { %1991 = vsyncpa [#allocation3], 1 }
 0x382   :  { %1993 = vsyncpa [#allocation3 + $0x1], 1 }
 0x383   :  { %1994 = vsyncpa [#allocation6], 1 }
 0x384   :  { %1996 = vsyncpa [#allocation6 + $0x1], 1 }
 0x385   :  { %1997 = vsyncpa [#allocation4], 1 }
 0x386   :  { %1999 = vsyncpa [#allocation4 + $0x1], 1 }

</bundles_post_ra>
